<compile_context>
chip_gen: v7x
topology: tpu7x:2x2x1
jax: 0.10.0
libtpu: 0.0.40
codegen_flags: <defaults>
</compile_context>

<pallas_src>
import functools

import jax
import jax.numpy as jnp
from jax.experimental import pallas as pl
from jax.experimental.pallas import tpu as pltpu


# ----------------- activations (mirror of the module's ACT2FN) -----------------

def _gelu(x):        # transformers' exact `gelu`: 0.5*x*(1+erf(x/sqrt(2)))
    return 0.5 * x * (1.0 + jax.lax.erf(x * (1.0 / jnp.sqrt(2.0).astype(x.dtype))))


def _gelu_new(x):    # tanh approximation -- tanh lands on the EUP slot, so this
    c = jnp.sqrt(2.0 / jnp.pi).astype(x.dtype)   # form co-issues with the MXU.
    return 0.5 * x * (1.0 + jnp.tanh(c * (x + 0.044715 * x * x * x)))


def _relu(x):
    return jnp.maximum(x, 0.0)


def _swish(x):
    return x * jax.nn.sigmoid(x)


def _mish(x):
    return x * jnp.tanh(jax.nn.softplus(x))


ACT2FN = {"gelu": _gelu, "relu": _relu, "swish": _swish,
          "gelu_new": _gelu_new, "mish": _mish}


def _round_up(x, m):
    return (x + m - 1) // m * m


# --------------------------------- kernel --------------------------------------

def _intermediate_kernel(x_ref, w_ref, b_ref, o_ref, *, act_fn):
    # x_ref: (tm, H) compute dtype, w_ref: (H, Ic) compute dtype, b_ref: (1, Ic) f32
    acc = jnp.dot(x_ref[...], w_ref[...], preferred_element_type=jnp.float32)
    h = act_fn(acc + b_ref[...])                 # elementwise math in f32
    o_ref[...] = h.astype(o_ref.dtype)


# ----------------------------- one-time weight prep -----------------------------

def prepare_intermediate_params(weight, bias, *, compute_dtype=jnp.bfloat16):
    """Model-init prep: cast W to the MXU compute dtype and pad the intermediate
    dim to a multiple of 128 (lane-dense output tiles). Run once; the hot path
    never re-casts or re-pads the weight.

    weight : [H, I]  (nn.Linear weight transposed to (in, out))
    bias   : [I] or [1, I]
    Returns (w_prepped [H, Ip], b_prepped [1, Ip] f32, I).
    """
    H, I = weight.shape
    Ip = _round_up(I, 128)
    w = weight.astype(compute_dtype)
    b = jnp.reshape(bias, (1, I)).astype(jnp.float32)
    if Ip != I:
        # act(0 @ x + 0) = 0 for every activation in ACT2FN, and the padded
        # columns are sliced off anyway.
        w = jnp.pad(w, ((0, 0), (0, Ip - I)))
        b = jnp.pad(b, ((0, 0), (0, Ip - I)))
    return w, b, I


# --------------------------------- hot path -------------------------------------

def bert_intermediate_prepared(hidden_states, w_p, b_p, intermediate_size=None, *,
                               act="gelu", tm=512, tn=512, out_dtype=None,
                               max_resident_weight_bytes=24 * 1024 * 1024,
                               single_buffer_weight=False,
                               vmem_limit_bytes=None):
    """act(hidden_states @ W + b) with a pre-prepared (cast + padded) weight.

    hidden_states : [..., H]   (pass bf16 upstream to avoid a cast pass)
    w_p           : [H, Ip]    from prepare_intermediate_params
    b_p           : [1, Ip] f32
    """
    act_fn = act if callable(act) else ACT2FN[act]

    orig_shape = hidden_states.shape
    H, Ip = w_p.shape
    I = Ip if intermediate_size is None else intermediate_size
    out_dtype = out_dtype or hidden_states.dtype
    compute_dtype = w_p.dtype

    x2d = hidden_states.reshape(-1, H).astype(compute_dtype)  # no-op if already cast
    M = x2d.shape[0]

    # bf16 packs two rows per sublane -> keep the row tile a multiple of 16.
    cb = jnp.dtype(compute_dtype).itemsize
    ob = jnp.dtype(out_dtype).itemsize
    row_align = 16 if cb < 4 else 8
    tm = min(tm, _round_up(M, row_align))
    Mp = _round_up(M, tm)
    if Mp != M:
        x2d = jnp.pad(x2d, ((0, Mp - M), (0, 0)))

    kernel = functools.partial(_intermediate_kernel, act_fn=act_fn)
    weight_bytes = H * Ip * cb
    resident = weight_bytes <= max_resident_weight_bytes

    if resident:
        # 1-D grid over row tiles; W/b have constant block index -> fetched once.
        grid = (Mp // tm,)
        w_kwargs = {"pipeline_mode": pl.Buffered(1)} if single_buffer_weight else {}
        in_specs = [
            pl.BlockSpec((tm, H), lambda i: (i, 0)),          # activation row tile
            pl.BlockSpec((H, Ip), lambda i: (0, 0), **w_kwargs),  # resident weight
            pl.BlockSpec((1, Ip), lambda i: (0, 0)),          # resident bias
        ]
        out_specs = pl.BlockSpec((tm, Ip), lambda i: (i, 0))
        dim_sem = ("parallel",)
        w_bufs = 1 if single_buffer_weight else 2
        est = (w_bufs * weight_bytes + 2 * tm * H * cb + 2 * Ip * 4
               + 2 * tm * Ip * ob + tm * Ip * 4)
    else:
        # Column-tiled fallback (weight too big for VMEM residency).
        # Pick the largest tn <= requested that is a multiple of 128 and
        # divides Ip, so no extra weight padding is needed in the hot path.
        k = Ip // 128
        d = max(dd for dd in range(1, max(1, min(tn // 128, k)) + 1) if k % dd == 0)
        tn = 128 * d
        grid = (Mp // tm, Ip // tn)
        in_specs = [
            pl.BlockSpec((tm, H), lambda i, j: (i, 0)),
            pl.BlockSpec((H, tn), lambda i, j: (0, j)),
            pl.BlockSpec((1, tn), lambda i, j: (0, j)),
        ]
        out_specs = pl.BlockSpec((tm, tn), lambda i, j: (i, j))
        dim_sem = ("parallel", "parallel")
        est = (2 * H * tn * cb + 2 * tm * H * cb + 2 * tn * 4
               + 2 * tm * tn * ob + tm * tn * 4)

    if vmem_limit_bytes is None:
        # Enough for the actual footprint (+ margin), never below the default.
        vmem_limit_bytes = int(min(max(est * 13 // 10 + (4 << 20), 32 << 20), 100 << 20))

    out = pl.pallas_call(
        kernel,
        out_shape=jax.ShapeDtypeStruct((Mp, Ip), out_dtype),
        grid_spec=pltpu.PrefetchScalarGridSpec(
            num_scalar_prefetch=0,
            grid=grid,
            in_specs=in_specs,
            out_specs=out_specs,
        ),
        compiler_params=pltpu.CompilerParams(
            dimension_semantics=dim_sem,
            vmem_limit_bytes=vmem_limit_bytes,
        ),
    )(x2d, w_p, b_p)

    out = out[:M, :I]
    return out.reshape(orig_shape[:-1] + (I,))


def bert_intermediate(hidden_states, weight, bias, *, act="gelu",
                      compute_dtype=jnp.bfloat16, **kwargs):
    """Convenience wrapper: prep + hot path in one call.

    NOTE: operands are computed in `compute_dtype` (bf16 by default) with f32
    accumulation; pass compute_dtype=jnp.float32 for exact-f32 matmul inputs.
    """
    w_p, b_p, I = prepare_intermediate_params(weight, bias, compute_dtype=compute_dtype)
    return bert_intermediate_prepared(hidden_states, w_p, b_p, I, act=act, **kwargs)


# ------------------------------- reference -------------------------------------

def _reference(hidden_states, weight, bias, act="gelu", compute_dtype=jnp.bfloat16):
    act_fn = ACT2FN[act]
    xr = hidden_states.astype(compute_dtype).astype(jnp.float32)
    wr = weight.astype(compute_dtype).astype(jnp.float32)
    h = xr @ wr + bias.reshape(-1).astype(jnp.float32)
    return act_fn(h)


if __name__ == "__main__":
    # Small config consistent with the module: batch=2, seq=8, hidden=32,
    # intermediate = 4 * hidden = 128.
    B, S, H, I = 2, 8, 32, 128

    key = jax.random.PRNGKey(0)
    k0, k1, k2, k3, k4 = jax.random.split(key, 5)

    hidden_states = jax.random.normal(k0, (B, S, H), dtype=jnp.float32)
    weight = 0.02 * jax.random.normal(k1, (H, I), dtype=jnp.float32)   # [in, out]
    bias = 0.01 * jax.random.normal(k2, (I,), dtype=jnp.float32)

    # "Model init": cast/pad the weight once; the hot path only touches x.
    w_p, b_p, I0 = prepare_intermediate_params(weight, bias)
    out = bert_intermediate_prepared(hidden_states, w_p, b_p, I0, act="gelu")
    jax.block_until_ready(out)
    ref = _reference(hidden_states, weight, bias, act="gelu")
    assert out.shape == (B, S, I)
    assert jnp.allclose(out, ref, atol=1e-3, rtol=1e-3), float(jnp.max(jnp.abs(out - ref)))

    # Ragged shapes (M not a multiple of 16, I not a multiple of 128) exercise
    # the padding path; 'mish' activation; bf16 output (recommended when the
    # consumer is the BertOutput matmul).
    h2 = jax.random.normal(k3, (3, 5, 32), dtype=jnp.float32)
    w2 = 0.02 * jax.random.normal(k4, (32, 96), dtype=jnp.float32)
    b2 = jnp.zeros((96,), dtype=jnp.float32)
    out2 = bert_intermediate(h2, w2, b2, act="mish", out_dtype=jnp.bfloat16)
    jax.block_until_ready(out2)
    ref2 = _reference(h2, w2, b2, act="mish")
    assert out2.shape == (3, 5, 96)
    err2 = float(jnp.max(jnp.abs(out2.astype(jnp.float32) - ref2)))
    assert jnp.allclose(out2.astype(jnp.float32), ref2, atol=2e-2, rtol=2e-2), err2

    # Force the column-tiled fallback (the path used when H*I doesn't fit VMEM).
    out3 = bert_intermediate(hidden_states, weight, bias, act="gelu",
                             max_resident_weight_bytes=0, tn=128)
    jax.block_until_ready(out3)
    assert jnp.allclose(out3, ref, atol=1e-3, rtol=1e-3)

    print("KERNEL_OK")
</pallas_src>

<mosaic_0001>
module attributes {stable_mosaic.version = 11 : i64} {
  func.func @_intermediate_kernel(%arg0: i32, %arg1: memref<16x32xbf16, #tpu.memory_space<vmem>>, %arg2: memref<32x128xbf16, #tpu.memory_space<vmem>>, %arg3: memref<1x128xf32, #tpu.memory_space<vmem>>, %arg4: memref<16x128xf32, #tpu.memory_space<vmem>>) attributes {dimension_semantics = [#tpu.dimension_semantics<parallel>], iteration_bounds = array<i64: 1>, scalar_prefetch = 0 : i64, scratch_operands = 0 : i64, tpu.core_type = #tpu.core_type<tc>, window_params = [{transform_indices = @transform_0, window_bounds = array<i64: 16, 32>}, {pipeline_mode = #tpu.pipeline_mode<synchronous>, transform_indices = @transform_1, window_bounds = array<i64: 32, 128>}, {pipeline_mode = #tpu.pipeline_mode<synchronous>, transform_indices = @transform_2, window_bounds = array<i64: 1, 128>}, {transform_indices = @transform_3, window_bounds = array<i64: 16, 128>}]} {
    %c0 = arith.constant 0 : index
    %c0_0 = arith.constant 0 : index
    %0 = vector.load %arg1[%c0, %c0_0] : memref<16x32xbf16, #tpu.memory_space<vmem>>, vector<16x32xbf16>
    %c0_1 = arith.constant 0 : index
    %c0_2 = arith.constant 0 : index
    %1 = vector.load %arg2[%c0_1, %c0_2] : memref<32x128xbf16, #tpu.memory_space<vmem>>, vector<32x128xbf16>
    %cst = arith.constant dense<0.000000e+00> : vector<16x128xf32>
    %2 = tpu.matmul %0, %1, %cst {dimension_numbers = #tpu.dot_dimension_numbers<[1], [0], [0], [1], [0, 0, 1, 1], [], []>} : vector<16x32xbf16>, vector<32x128xbf16>, vector<16x128xf32> -> vector<16x128xf32>
    %c0_3 = arith.constant 0 : index
    %c0_4 = arith.constant 0 : index
    %3 = vector.load %arg3[%c0_3, %c0_4] : memref<1x128xf32, #tpu.memory_space<vmem>>, vector<1x128xf32>
    %4 = vector.broadcast %3 : vector<1x128xf32> to vector<16x128xf32>
    %5 = arith.addf %2, %4 : vector<16x128xf32>
    %cst_5 = arith.constant 5.000000e-01 : f32
    %6 = vector.broadcast %cst_5 : f32 to vector<16x128xf32>
    %7 = arith.mulf %6, %5 : vector<16x128xf32>
    %cst_6 = arith.constant 2.000000e+00 : f32
    %8 = math.sqrt %cst_6 : f32
    %cst_7 = arith.constant 1.000000e+00 : f32
    %9 = arith.divf %cst_7, %8 : f32
    %10 = vector.broadcast %9 : f32 to vector<16x128xf32>
    %11 = arith.mulf %5, %10 : vector<16x128xf32>
    %12 = math.erf %11 : vector<16x128xf32>
    %cst_8 = arith.constant 1.000000e+00 : f32
    %13 = vector.broadcast %cst_8 : f32 to vector<16x128xf32>
    %14 = arith.addf %13, %12 : vector<16x128xf32>
    %15 = arith.mulf %7, %14 : vector<16x128xf32>
    %c0_9 = arith.constant 0 : index
    %c0_10 = arith.constant 0 : index
    %16 = vector.load %arg4[%c0_9, %c0_10] : memref<16x128xf32, #tpu.memory_space<vmem>>, vector<16x128xf32>
    tpu.vector_store %arg4[%c0_9, %c0_10], %15 {strides = array<i32>} : memref<16x128xf32, #tpu.memory_space<vmem>>, vector<16x128xf32>,
    return
  }
  func.func @transform_0(%arg0: i32) -> (i32, i32) {
    %c0_i32 = arith.constant 0 : i32
    %c0_i32_0 = arith.constant 0 : i32
    return %arg0, %c0_i32 : i32, i32
  }
  func.func @transform_1(%arg0: i32) -> (i32, i32) {
    %c0_i32 = arith.constant 0 : i32
    %c0_i32_0 = arith.constant 0 : i32
    %c0_i32_1 = arith.constant 0 : i32
    return %c0_i32, %c0_i32_0 : i32, i32
  }
  func.func @transform_2(%arg0: i32) -> (i32, i32) {
    %c0_i32 = arith.constant 0 : i32
    %c0_i32_0 = arith.constant 0 : i32
    %c0_i32_1 = arith.constant 0 : i32
    return %c0_i32, %c0_i32_0 : i32, i32
  }
  func.func @transform_3(%arg0: i32) -> (i32, i32) {
    %c0_i32 = arith.constant 0 : i32
    %c0_i32_0 = arith.constant 0 : i32
    return %arg0, %c0_i32 : i32, i32
  }
}

</mosaic_0001>

<bundles_post_ra>
// kernel: tpu_custom_call.1
= control target key start
LH: loop header
LB: loop body
LE: loop exit
PB: predicated region body
PF: predicated region fallthrough
CT: control target
= control target key end

     0   :  { %8 = vsyncpa [#allocation3], 0  ;;  %s321_s0 = inlined_call_operand.hbm [shape: bf16[16,32], index: 0, kind: input, shape index: {}]   ;;  %s322_s1 = inlined_call_operand.hbm [shape: bf16[32,128], index: 1, kind: input, shape index: {}]   ;;  %s323_s2 = inlined_call_operand.vmem [shape: f32[1,128], index: 2, kind: input, shape index: {}]   ;;  %s324_s3 = inlined_call_operand.hbm [shape: f32[16,128], index: 3, kind: output, shape index: {}]  }
   0x1   :  { %9 = vsyncpa [#allocation6], 0 }
   0x2   :  { %10 = vsyncpa [#allocation4], 0  ;;  %s253_s12 = smov [#allocation2]   ;;  %s181_s16 = scalar_lea.hbm %s321_s0, 128 }
   0x3   :  { %s16_s13 = sshll.u32 %s253_s12, 4  ;;  %p182_p0 = scmp.ne.s32.totalorder %s321_s0, %s181_s16  ;;  %s17_s13 = int_to_ptr.vmem [resolvable:$true] %s16_s13 }
   0x4   :  { %p185_p1 = scmp.lt.u32.totalorder %s181_s16, %s321_s0 }
   0x6   :  { %p187_p2 = pnand %p185_p1, %p182_p0 }
   0x8   :  { %190 = shalt.err (!%p187_p2)
}
   0x9   :  { %s191_s21 = scalar_lea.vmem %s17_s13, 128  ;;  %p196_p4 = scmp.lt.s32.totalorder %s17_s13, %s17_s13 }
   0xa   :  { %p192_p3 = scmp.ne.s32.totalorder %s17_s13, %s191_s21  ;;  %p197_p5 = scmp.lt.s32.totalorder %s191_s21, %s191_s21 }
   0xc   :  { %p198_p6 = por %p197_p5, %p196_p4 }
   0xe   :  { %p199_p7 = pnand %p198_p6, %p192_p3 }
  0x10   :  { %202 = shalt.err (!%p199_p7)
}
  0x11   :  { %s254_s22 = smov 64   ;;  %s255_s23 = smov 4  }
  0x12   :  { %22 = dma.hbm_to_vmem [thread:$0]  %s321_s0, 128, %s17_s13, [#allocation3], %s254_s22, %s254_s22, %s255_s23  }
  0x13   :  { %s256_s26 = smov [#allocation5]   ;;  %s203_s30 = scalar_lea.hbm %s322_s1, 256 }
  0x14   :  { %s28_s27 = sshll.u32 %s256_s26, 4  ;;  %p204_p8 = scmp.ne.s32.totalorder %s322_s1, %s203_s30  ;;  %s29_s27 = int_to_ptr.vmem [resolvable:$true] %s28_s27 }
  0x15   :  { %p207_p9 = scmp.lt.u32.totalorder %s203_s30, %s322_s1 }
  0x17   :  { %p209_p10 = pnand %p207_p9, %p204_p8 }
  0x19   :  { %212 = shalt.err (!%p209_p10)
}
  0x1a   :  { %s213_s8 = scalar_lea.vmem %s29_s27, 256  ;;  %p218_p12 = scmp.lt.s32.totalorder %s29_s27, %s29_s27 }
  0x1b   :  { %p214_p11 = scmp.ne.s32.totalorder %s29_s27, %s213_s8  ;;  %p219_p13 = scmp.lt.s32.totalorder %s213_s8, %s213_s8 }
  0x1d   :  { %p220_p0 = por %p219_p13, %p218_p12 }
  0x1f   :  { %p221_p1 = pnand %p220_p0, %p214_p11 }
  0x21   :  { %224 = shalt.err (!%p221_p1)
}
  0x22   :  { %34 = dma.hbm_to_vmem [thread:$0]  %s322_s1, 256, %s29_s27, [#allocation6], %s254_s22, %s254_s22, %s255_s23  }
  0x23   :  { %247 = dma.done.wait [#allocation3], 128  }
  0x24   :  { %248 = vsyncadd [#allocation3], 4294967168 }
  0x25   :  { %249 = dma.done.wait [#allocation6], 256  }
  0x26   :  { %250 = vsyncadd [#allocation6], 4294967040  ;;  %v257_v0 = vmov 0.0   ;;  %vm258_vm0 = vmmov 0   ;;  %v174_v1 = vld [vmem:[#allocation5] sm:$0xff]   ;;  %v175_v2 = vld [vmem:[#allocation5 + $0x8] sm:$0xff]  }
  0x27   :  { %157 = vmatprep.subr.bf16.mxu0 %v257_v0  ;;  %161 = vmatprep.mubr.msk.bf16.mxu0 %vm258_vm0, %v257_v0  ;;  %v176_v3 = vld [vmem:[#allocation2] sm:$0xff]   ;;  %vm74_vm1 = vcmask 261120   ;;  %s259_s1 = smov [#allocation7]  }
  0x28   :  { %158 = vmatpush3.bf16.msra.mxu0 %v174_v1  ;;  %v149_v4 = vld [vmem:[%s323_s2] ss:$0 sm:$0xff]  ;;  %s136_s12 = sshll.u32 %s259_s1, 4  ;;  %s137_s12 = int_to_ptr.vmem [resolvable:$true] %s136_s12 }
  0x29   :  { %159 = vmatprep.subr.bf16.mxu0 %v257_v0  ;;  %s225_s2 = scalar_lea.vmem %s137_s12, 256  ;;  %p230_p3 = scmp.lt.s32.totalorder %s137_s12, %s137_s12 }
  0x2a   :  { %p226_p2 = scmp.ne.s32.totalorder %s137_s12, %s225_s2  ;;  %p231_p4 = scmp.lt.s32.totalorder %s225_s2, %s225_s2 }
  0x2c   :  { %160 = vmatpush3.bf16.msra.mxu0 %v175_v2  ;;  %p232_p5 = por %p231_p4, %p230_p3 }
  0x2e   :  { %p233_p6 = pnand %p232_p5, %p226_p2 }
  0x2f   :  { %162 = vmatmul.mubr.msk.bf16.vlgmr.msra.gmra.mrb[0].mxu0 %vm74_vm1, %v176_v3 }
 0x102   :  { %v112_v5 = vpop.f32.mrb[0].mxu0 }
 0x103   :  { %v113_v6 = vadd.f32 %v149_v4, %v112_v5  ;;  %v163_v7 = vpop.f32.mrb[1].mxu0 }
 0x104   :  { %v115_v8 = vpop.f32.mrb[2].mxu0 }
 0x105   :  { %v121_v9 = vmul.f32 0.70710677, %v113_v6  ;;  %v116_v10 = vadd.f32 %v149_v4, %v115_v8  ;;  %v164_v11 = vpop.f32.mrb[3].mxu0  ;;  %v119_v14 = vmul.f32 0.5, %v113_v6 }
 0x107   :  { %177 = verf.f32 %v121_v9  ;;  %v122_v12 = vmul.f32 0.70710677, %v116_v10  ;;  %v120_v18 = vmul.f32 0.5, %v116_v10 }
 0x109   :  { %179 = verf.f32 %v122_v12 }
 0x111   :  { %v178_v13 = vpop.eup %177 }
 0x112   :  { %v125_v15 = vadd.f32 1.0, %v178_v13 }
 0x113   :  { %v180_v16 = vpop.eup %179 }
 0x114   :  { %v127_v17 = vmul.f32 %v125_v15, %v119_v14  ;;  %v126_v19 = vadd.f32 1.0, %v180_v16 }
 0x116   :  { %129 = vst [vmem:[#allocation7] sm:$0xff] %v127_v17  ;;  %v128_v20 = vmul.f32 %v126_v19, %v120_v18 }
 0x118   :  { %130 = vst [vmem:[#allocation7 + $0x8] sm:$0xff] %v128_v20 }
 0x119   :  { %236 = shalt.err (!%p233_p6)
}
 0x11a   :  { %s237_s15 = scalar_lea.hbm %s324_s3, 256 }
 0x11b   :  { %p238_p7 = scmp.ne.s32.totalorder %s324_s3, %s237_s15  ;;  %p241_p8 = scmp.lt.u32.totalorder %s237_s15, %s324_s3 }
 0x11d   :  { %p243_p9 = pnand %p241_p8, %p238_p7 }
 0x11f   :  { %246 = shalt.err (!%p243_p9)
}
 0x120   :  { %s260_s20 = smov 128   ;;  %s261_s21 = smov 8  }
 0x121   :  { %142 = dma.vmem_to_hbm [thread:$0]  %s137_s12, 256, %s324_s3, [#allocation4], %s260_s20, %s260_s20, %s261_s21  }
 0x122   :  { %251 = dma.done.wait [#allocation4], 256  }
 0x123   :  { %252 = vsyncadd [#allocation4], 4294967040 }
 0x124   :  { %146 = vsyncpa [#allocation3], 1 }
 0x125   :  { %147 = vsyncpa [#allocation6], 1 }
 0x126   :  { %148 = vsyncpa [#allocation4], 1 }

</bundles_post_ra>
